<compile_context>
chip_gen: v7x
topology: tpu7x:2x2x1
jax: 0.10.0
libtpu: 0.0.40
codegen_flags: <defaults>
</compile_context>

<pallas_src>
import jax
import jax.numpy as jnp
from jax import lax
from jax.experimental import pallas as pl
from jax.experimental.pallas import tpu as pltpu

B, T, DIN, H = 2, 100, 14, 60   # T >= 96 required by y1[:, -96:, :]
HP = 64                         # hidden padded to 64 lanes (gate blocks 64-aligned)
OUT_T = 96
GROUP = 4                       # timesteps per statically-unrolled group
ROWS_PER_GROUP = GROUP * B      # 8 rows -> full 8-sublane tiles, T*B % 8 == 0


def lstm_kernel(xs_ref, wih_ref, whh_ref, bias_ref, wlin_ref, blin_ref,
                out_ref, gx_ref, hs_ref):
    # xs_ref:   (T*B, DIN)   time-major rows (row = t*B + b)
    # wih_ref:  (DIN, 4*HP)  gate order [i, f, o, g], padded cols zero
    # whh_ref:  (HP, 4*HP)   padded rows/cols zero
    # bias_ref: (1, 4*HP)    b_ih + b_hh, padded lanes zero
    # wlin_ref: (HP, 1)      padded rows zero
    # blin_ref: (1, 1)
    # out_ref:  (96*B, 1)
    # scratch:  gx (T*B, 4*HP) precomputed input gates, hs (T*B, HP) h history
    n_b = B
    hp = HP
    n_steps = T
    n_groups = n_steps // GROUP          # 25, exact (no remainder)

    # Hoisted input projection for all timesteps: one well-shaped matmul, bias folded.
    gx_ref[...] = (jnp.dot(xs_ref[...], wih_ref[...],
                           preferred_element_type=jnp.float32) + bias_ref[...])

    # Recurrent weight resident in vregs across the whole recurrence (16 vregs).
    whh = whh_ref[...]

    def cell(z, h, c):
        # One EUP tanh pass over [i|f|o] (exact sigmoid identity), one over [g].
        sig = 0.5 * jnp.tanh(0.5 * z[:, :3 * hp]) + 0.5
        g_g = jnp.tanh(z[:, 3 * hp:])
        i_g = sig[:, :hp]
        f_g = sig[:, hp:2 * hp]
        o_g = sig[:, 2 * hp:3 * hp]
        c_new = f_g * c + i_g * g_g
        h_new = o_g * jnp.tanh(c_new)
        return h_new, c_new

    def group_step(g, carry):
        h, c = carry
        row8 = pl.multiple_of(g * ROWS_PER_GROUP, ROWS_PER_GROUP)
        gx_g = gx_ref[pl.ds(row8, ROWS_PER_GROUP), :]        # aligned (8, 4*HP) load
        hs_rows = []
        for j in range(GROUP):                               # statically unrolled x4
            z = gx_g[j * n_b:(j + 1) * n_b, :] + jnp.dot(
                h, whh, preferred_element_type=jnp.float32)  # fused (B,HP)@(HP,4*HP)
            h, c = cell(z, h, c)
            hs_rows.append(h)
        # One aligned, unmasked-sublane (8, HP) store per group.
        hs_ref[pl.ds(row8, ROWS_PER_GROUP), :] = jnp.concatenate(hs_rows, axis=0)
        return (h, c)

    h0 = jnp.zeros((n_b, hp), jnp.float32)
    c0 = jnp.zeros((n_b, hp), jnp.float32)
    lax.fori_loop(0, n_groups, group_step, (h0, c0))

    # Linear(60 -> 1) over the last 96 timesteps as ONE matmul, single output write.
    start = (n_steps - OUT_T) * n_b                          # static, multiple of 8
    h_last = hs_ref[pl.ds(start, OUT_T * n_b), :]            # (96*B, HP)
    out_ref[...] = (jnp.dot(h_last, wlin_ref[...],
                            preferred_element_type=jnp.float32) + blin_ref[...])


def lstm_net_forward(x, kparams):
    """x: (B, T, 14) float32 -> (B, 96) float32, matching LstmNet.forward."""
    wih, whh, bias, wlin, blin = kparams
    b, t, din = x.shape
    xs = jnp.transpose(x, (1, 0, 2)).reshape(t * b, din)     # time-major rows

    ys = pl.pallas_call(
        lstm_kernel,
        out_shape=jax.ShapeDtypeStruct((OUT_T * b, 1), jnp.float32),
        in_specs=[
            pl.BlockSpec(memory_space=pltpu.MemorySpace.VMEM),  # xs
            pl.BlockSpec(memory_space=pltpu.MemorySpace.VMEM),  # w_ih_cat
            pl.BlockSpec(memory_space=pltpu.MemorySpace.VMEM),  # w_hh_cat
            pl.BlockSpec(memory_space=pltpu.MemorySpace.VMEM),  # bias_cat
            pl.BlockSpec(memory_space=pltpu.MemorySpace.VMEM),  # w_lin
            pl.BlockSpec(memory_space=pltpu.MemorySpace.VMEM),  # b_lin
        ],
        out_specs=pl.BlockSpec(memory_space=pltpu.MemorySpace.VMEM),
        scratch_shapes=[
            pltpu.VMEM((t * b, 4 * HP), jnp.float32),   # precomputed input gates
            pltpu.VMEM((t * b, HP), jnp.float32),       # h history
        ],
    )(xs, wih, whh, bias, wlin, blin)

    # ys rows are ordered (t_rel, b): row = t_rel*B + b, t_rel over the last 96 steps.
    y = ys.reshape(OUT_T, b).T                  # (B, 96)
    return y.reshape(-1, OUT_T)


def make_params(key):
    """Deterministic params with PyTorch layouts/shapes (gate order [i, f, g, o])."""
    k = 1.0 / jnp.sqrt(jnp.float32(H))
    keys = jax.random.split(key, 6)
    w_ih = jax.random.uniform(keys[0], (4 * H, DIN), jnp.float32, -k, k)
    w_hh = jax.random.uniform(keys[1], (4 * H, H), jnp.float32, -k, k)
    b_ih = jax.random.uniform(keys[2], (4 * H,), jnp.float32, -k, k)
    b_hh = jax.random.uniform(keys[3], (4 * H,), jnp.float32, -k, k)
    w_lin = jax.random.uniform(keys[4], (1, H), jnp.float32, -k, k)
    b_lin = jax.random.uniform(keys[5], (1,), jnp.float32, -k, k)
    return w_ih, w_hh, b_ih, b_hh, w_lin, b_lin


def prep_params(pt_params):
    """PyTorch layout -> fused/padded kernel layout.

    Gate order reordered [i, f, g, o] -> [i, f, o, g]; each gate padded 60 -> 64.
    All padded weight/bias entries are zero so padded lanes of h/c stay exactly 0.
    """
    w_ih, w_hh, b_ih, b_hh, w_lin, b_lin = pt_params
    order = (0, 1, 3, 2)   # i, f, o, g

    w_ih_g = w_ih.reshape(4, H, DIN)
    w_hh_g = w_hh.reshape(4, H, H)
    b_g = (b_ih + b_hh).reshape(4, H)

    wih_cat = jnp.concatenate(
        [jnp.pad(w_ih_g[g].T, ((0, 0), (0, HP - H))) for g in order], axis=1)       # (DIN, 4*HP)
    whh_cat = jnp.concatenate(
        [jnp.pad(w_hh_g[g].T, ((0, HP - H), (0, HP - H))) for g in order], axis=1)  # (HP, 4*HP)
    bias_cat = jnp.concatenate(
        [jnp.pad(b_g[g], (0, HP - H)) for g in order]).reshape(1, 4 * HP)           # (1, 4*HP)
    wlin = jnp.pad(w_lin.T, ((0, HP - H), (0, 0)))                                  # (HP, 1)
    blin = b_lin.reshape(1, 1)                                                      # (1, 1)
    return wih_cat, whh_cat, bias_cat, wlin, blin


def lstm_net_ref(x, pt_params):
    """Pure-JAX reference with PyTorch conventions (independent of kernel layout)."""
    w_ih, w_hh, b_ih, b_hh, w_lin, b_lin = pt_params
    b = x.shape[0]

    def step(carry, x_t):
        h, c = carry
        z = x_t @ w_ih.T + h @ w_hh.T + b_ih + b_hh      # gate order [i, f, g, o]
        i = jax.nn.sigmoid(z[:, 0:H])
        f = jax.nn.sigmoid(z[:, H:2 * H])
        g = jnp.tanh(z[:, 2 * H:3 * H])
        o = jax.nn.sigmoid(z[:, 3 * H:4 * H])
        c = f * c + i * g
        h = o * jnp.tanh(c)
        return (h, c), h

    init = (jnp.zeros((b, H), jnp.float32), jnp.zeros((b, H), jnp.float32))
    _, hs = lax.scan(step, init, jnp.transpose(x, (1, 0, 2)))   # (T, B, H)
    y = hs @ w_lin.T + b_lin                                    # (T, B, 1)
    y = jnp.transpose(y, (1, 0, 2))[:, -96:, :]                 # (B, 96, 1)
    return y.reshape(-1, 96)


if __name__ == "__main__":
    key = jax.random.PRNGKey(0)
    kx, kp = jax.random.split(key)
    x = jax.random.normal(kx, (B, T, DIN), jnp.float32)
    pt_params = make_params(kp)
    kparams = prep_params(pt_params)

    out = jax.block_until_ready(jax.jit(lstm_net_forward)(x, kparams))
    ref = jax.block_until_ready(lstm_net_ref(x, pt_params))

    assert out.shape == (B, 96), out.shape
    assert jnp.allclose(out, ref, atol=1e-3, rtol=1e-3), float(jnp.max(jnp.abs(out - ref)))
    print("KERNEL_OK")
</pallas_src>

<mosaic_0001>
module attributes {stable_mosaic.version = 11 : i64} {
  func.func @lstm_kernel(%arg0: memref<200x14xf32, #tpu.memory_space<vmem>>, %arg1: memref<14x256xf32, #tpu.memory_space<vmem>>, %arg2: memref<64x256xf32, #tpu.memory_space<vmem>>, %arg3: memref<1x256xf32, #tpu.memory_space<vmem>>, %arg4: memref<64x1xf32, #tpu.memory_space<vmem>>, %arg5: memref<1x1xf32, #tpu.memory_space<vmem>>, %arg6: memref<192x1xf32, #tpu.memory_space<vmem>>, %arg7: memref<200x256xf32, #tpu.memory_space<vmem>>, %arg8: memref<200x64xf32, #tpu.memory_space<vmem>>) attributes {dimension_semantics = [], scalar_prefetch = 0 : i64, scratch_operands = 2 : i64, tpu.core_type = #tpu.core_type<tc>} {
    %c0 = arith.constant 0 : index
    %c0_0 = arith.constant 0 : index
    %0 = vector.load %arg0[%c0, %c0_0] : memref<200x14xf32, #tpu.memory_space<vmem>>, vector<200x14xf32>
    %c0_1 = arith.constant 0 : index
    %c0_2 = arith.constant 0 : index
    %1 = vector.load %arg1[%c0_1, %c0_2] : memref<14x256xf32, #tpu.memory_space<vmem>>, vector<14x256xf32>
    %cst = arith.constant dense<0.000000e+00> : vector<200x256xf32>
    %2 = tpu.matmul %0, %1, %cst {dimension_numbers = #tpu.dot_dimension_numbers<[1], [0], [0], [1], [0, 0, 1, 1], [], []>} : vector<200x14xf32>, vector<14x256xf32>, vector<200x256xf32> -> vector<200x256xf32>
    %c0_3 = arith.constant 0 : index
    %c0_4 = arith.constant 0 : index
    %3 = vector.load %arg3[%c0_3, %c0_4] : memref<1x256xf32, #tpu.memory_space<vmem>>, vector<1x256xf32>
    %4 = vector.broadcast %3 : vector<1x256xf32> to vector<200x256xf32>
    %5 = arith.addf %2, %4 : vector<200x256xf32>
    %c0_5 = arith.constant 0 : index
    %c0_6 = arith.constant 0 : index
    %6 = vector.load %arg7[%c0_5, %c0_6] : memref<200x256xf32, #tpu.memory_space<vmem>>, vector<200x256xf32>
    tpu.vector_store %arg7[%c0_5, %c0_6], %5 {strides = array<i32>} : memref<200x256xf32, #tpu.memory_space<vmem>>, vector<200x256xf32>,
    %c0_7 = arith.constant 0 : index
    %c0_8 = arith.constant 0 : index
    %7 = vector.load %arg2[%c0_7, %c0_8] : memref<64x256xf32, #tpu.memory_space<vmem>>, vector<64x256xf32>
    %cst_9 = arith.constant 0.000000e+00 : f32
    %8 = vector.broadcast %cst_9 : f32 to vector<2x64xf32>
    %cst_10 = arith.constant 0.000000e+00 : f32
    %9 = vector.broadcast %cst_10 : f32 to vector<2x64xf32>
    %c0_i32 = arith.constant 0 : i32
    %c25_i32 = arith.constant 25 : i32
    %10 = arith.addi %c0_i32, %c25_i32 : i32
    %c1_i32 = arith.constant 1 : i32
    %11:2 = scf.for %arg9 = %c0_i32 to %10 step %c1_i32 iter_args(%arg10 = %8, %arg11 = %9) -> (vector<2x64xf32>, vector<2x64xf32>)  : i32 {
      %c8_i32 = arith.constant 8 : i32
      %19 = arith.muli %arg9, %c8_i32 : i32
      %20 = tpu.assume_multiple %19, 8 : i32
      %21 = arith.index_cast %20 : i32 to index
      %c0_20 = arith.constant 0 : index
      %22 = vector.load %arg7[%21, %c0_20] : memref<200x256xf32, #tpu.memory_space<vmem>>, vector<8x256xf32>
      %23 = vector.extract_strided_slice %22 {offsets = [0, 0], sizes = [2, 256], strides = [1, 1]} : vector<8x256xf32> to vector<2x256xf32>
      %cst_21 = arith.constant dense<0.000000e+00> : vector<2x256xf32>
      %24 = tpu.matmul %arg10, %7, %cst_21 {dimension_numbers = #tpu.dot_dimension_numbers<[1], [0], [0], [1], [0, 0, 1, 1], [], []>} : vector<2x64xf32>, vector<64x256xf32>, vector<2x256xf32> -> vector<2x256xf32>
      %25 = arith.addf %23, %24 : vector<2x256xf32>
      %26 = vector.extract_strided_slice %25 {offsets = [0, 0], sizes = [2, 192], strides = [1, 1]} : vector<2x256xf32> to vector<2x192xf32>
      %cst_22 = arith.constant 5.000000e-01 : f32
      %27 = vector.broadcast %cst_22 : f32 to vector<2x192xf32>
      %28 = arith.mulf %27, %26 : vector<2x192xf32>
      %29 = math.tanh %28 : vector<2x192xf32>
      %cst_23 = arith.constant 5.000000e-01 : f32
      %30 = vector.broadcast %cst_23 : f32 to vector<2x192xf32>
      %31 = arith.mulf %30, %29 : vector<2x192xf32>
      %cst_24 = arith.constant 5.000000e-01 : f32
      %32 = vector.broadcast %cst_24 : f32 to vector<2x192xf32>
      %33 = arith.addf %31, %32 : vector<2x192xf32>
      %34 = vector.extract_strided_slice %25 {offsets = [0, 192], sizes = [2, 64], strides = [1, 1]} : vector<2x256xf32> to vector<2x64xf32>
      %35 = math.tanh %34 : vector<2x64xf32>
      %36 = vector.extract_strided_slice %33 {offsets = [0, 0], sizes = [2, 64], strides = [1, 1]} : vector<2x192xf32> to vector<2x64xf32>
      %37 = vector.extract_strided_slice %33 {offsets = [0, 64], sizes = [2, 64], strides = [1, 1]} : vector<2x192xf32> to vector<2x64xf32>
      %38 = vector.extract_strided_slice %33 {offsets = [0, 128], sizes = [2, 64], strides = [1, 1]} : vector<2x192xf32> to vector<2x64xf32>
      %39 = arith.mulf %37, %arg11 : vector<2x64xf32>
      %40 = arith.mulf %36, %35 : vector<2x64xf32>
      %41 = arith.addf %39, %40 : vector<2x64xf32>
      %42 = math.tanh %41 : vector<2x64xf32>
      %43 = arith.mulf %38, %42 : vector<2x64xf32>
      %44 = vector.extract_strided_slice %22 {offsets = [2, 0], sizes = [2, 256], strides = [1, 1]} : vector<8x256xf32> to vector<2x256xf32>
      %cst_25 = arith.constant dense<0.000000e+00> : vector<2x256xf32>
      %45 = tpu.matmul %43, %7, %cst_25 {dimension_numbers = #tpu.dot_dimension_numbers<[1], [0], [0], [1], [0, 0, 1, 1], [], []>} : vector<2x64xf32>, vector<64x256xf32>, vector<2x256xf32> -> vector<2x256xf32>
      %46 = arith.addf %44, %45 : vector<2x256xf32>
      %47 = vector.extract_strided_slice %46 {offsets = [0, 0], sizes = [2, 192], strides = [1, 1]} : vector<2x256xf32> to vector<2x192xf32>
      %cst_26 = arith.constant 5.000000e-01 : f32
      %48 = vector.broadcast %cst_26 : f32 to vector<2x192xf32>
      %49 = arith.mulf %48, %47 : vector<2x192xf32>
      %50 = math.tanh %49 : vector<2x192xf32>
      %cst_27 = arith.constant 5.000000e-01 : f32
      %51 = vector.broadcast %cst_27 : f32 to vector<2x192xf32>
      %52 = arith.mulf %51, %50 : vector<2x192xf32>
      %cst_28 = arith.constant 5.000000e-01 : f32
      %53 = vector.broadcast %cst_28 : f32 to vector<2x192xf32>
      %54 = arith.addf %52, %53 : vector<2x192xf32>
      %55 = vector.extract_strided_slice %46 {offsets = [0, 192], sizes = [2, 64], strides = [1, 1]} : vector<2x256xf32> to vector<2x64xf32>
      %56 = math.tanh %55 : vector<2x64xf32>
      %57 = vector.extract_strided_slice %54 {offsets = [0, 0], sizes = [2, 64], strides = [1, 1]} : vector<2x192xf32> to vector<2x64xf32>
      %58 = vector.extract_strided_slice %54 {offsets = [0, 64], sizes = [2, 64], strides = [1, 1]} : vector<2x192xf32> to vector<2x64xf32>
      %59 = vector.extract_strided_slice %54 {offsets = [0, 128], sizes = [2, 64], strides = [1, 1]} : vector<2x192xf32> to vector<2x64xf32>
      %60 = arith.mulf %58, %41 : vector<2x64xf32>
      %61 = arith.mulf %57, %56 : vector<2x64xf32>
      %62 = arith.addf %60, %61 : vector<2x64xf32>
      %63 = math.tanh %62 : vector<2x64xf32>
      %64 = arith.mulf %59, %63 : vector<2x64xf32>
      %65 = vector.extract_strided_slice %22 {offsets = [4, 0], sizes = [2, 256], strides = [1, 1]} : vector<8x256xf32> to vector<2x256xf32>
      %cst_29 = arith.constant dense<0.000000e+00> : vector<2x256xf32>
      %66 = tpu.matmul %64, %7, %cst_29 {dimension_numbers = #tpu.dot_dimension_numbers<[1], [0], [0], [1], [0, 0, 1, 1], [], []>} : vector<2x64xf32>, vector<64x256xf32>, vector<2x256xf32> -> vector<2x256xf32>
      %67 = arith.addf %65, %66 : vector<2x256xf32>
      %68 = vector.extract_strided_slice %67 {offsets = [0, 0], sizes = [2, 192], strides = [1, 1]} : vector<2x256xf32> to vector<2x192xf32>
      %cst_30 = arith.constant 5.000000e-01 : f32
      %69 = vector.broadcast %cst_30 : f32 to vector<2x192xf32>
      %70 = arith.mulf %69, %68 : vector<2x192xf32>
      %71 = math.tanh %70 : vector<2x192xf32>
      %cst_31 = arith.constant 5.000000e-01 : f32
      %72 = vector.broadcast %cst_31 : f32 to vector<2x192xf32>
      %73 = arith.mulf %72, %71 : vector<2x192xf32>
      %cst_32 = arith.constant 5.000000e-01 : f32
      %74 = vector.broadcast %cst_32 : f32 to vector<2x192xf32>
      %75 = arith.addf %73, %74 : vector<2x192xf32>
      %76 = vector.extract_strided_slice %67 {offsets = [0, 192], sizes = [2, 64], strides = [1, 1]} : vector<2x256xf32> to vector<2x64xf32>
      %77 = math.tanh %76 : vector<2x64xf32>
      %78 = vector.extract_strided_slice %75 {offsets = [0, 0], sizes = [2, 64], strides = [1, 1]} : vector<2x192xf32> to vector<2x64xf32>
      %79 = vector.extract_strided_slice %75 {offsets = [0, 64], sizes = [2, 64], strides = [1, 1]} : vector<2x192xf32> to vector<2x64xf32>
      %80 = vector.extract_strided_slice %75 {offsets = [0, 128], sizes = [2, 64], strides = [1, 1]} : vector<2x192xf32> to vector<2x64xf32>
      %81 = arith.mulf %79, %62 : vector<2x64xf32>
      %82 = arith.mulf %78, %77 : vector<2x64xf32>
      %83 = arith.addf %81, %82 : vector<2x64xf32>
      %84 = math.tanh %83 : vector<2x64xf32>
      %85 = arith.mulf %80, %84 : vector<2x64xf32>
      %86 = vector.extract_strided_slice %22 {offsets = [6, 0], sizes = [2, 256], strides = [1, 1]} : vector<8x256xf32> to vector<2x256xf32>
      %cst_33 = arith.constant dense<0.000000e+00> : vector<2x256xf32>
      %87 = tpu.matmul %85, %7, %cst_33 {dimension_numbers = #tpu.dot_dimension_numbers<[1], [0], [0], [1], [0, 0, 1, 1], [], []>} : vector<2x64xf32>, vector<64x256xf32>, vector<2x256xf32> -> vector<2x256xf32>
      %88 = arith.addf %86, %87 : vector<2x256xf32>
      %89 = vector.extract_strided_slice %88 {offsets = [0, 0], sizes = [2, 192], strides = [1, 1]} : vector<2x256xf32> to vector<2x192xf32>
      %cst_34 = arith.constant 5.000000e-01 : f32
      %90 = vector.broadcast %cst_34 : f32 to vector<2x192xf32>
      %91 = arith.mulf %90, %89 : vector<2x192xf32>
      %92 = math.tanh %91 : vector<2x192xf32>
      %cst_35 = arith.constant 5.000000e-01 : f32
      %93 = vector.broadcast %cst_35 : f32 to vector<2x192xf32>
      %94 = arith.mulf %93, %92 : vector<2x192xf32>
      %cst_36 = arith.constant 5.000000e-01 : f32
      %95 = vector.broadcast %cst_36 : f32 to vector<2x192xf32>
      %96 = arith.addf %94, %95 : vector<2x192xf32>
      %97 = vector.extract_strided_slice %88 {offsets = [0, 192], sizes = [2, 64], strides = [1, 1]} : vector<2x256xf32> to vector<2x64xf32>
      %98 = math.tanh %97 : vector<2x64xf32>
      %99 = vector.extract_strided_slice %96 {offsets = [0, 0], sizes = [2, 64], strides = [1, 1]} : vector<2x192xf32> to vector<2x64xf32>
      %100 = vector.extract_strided_slice %96 {offsets = [0, 64], sizes = [2, 64], strides = [1, 1]} : vector<2x192xf32> to vector<2x64xf32>
      %101 = vector.extract_strided_slice %96 {offsets = [0, 128], sizes = [2, 64], strides = [1, 1]} : vector<2x192xf32> to vector<2x64xf32>
      %102 = arith.mulf %100, %83 : vector<2x64xf32>
      %103 = arith.mulf %99, %98 : vector<2x64xf32>
      %104 = arith.addf %102, %103 : vector<2x64xf32>
      %105 = math.tanh %104 : vector<2x64xf32>
      %106 = arith.mulf %101, %105 : vector<2x64xf32>
      %107 = tpu.concatenate %43, %64, %85, %106 in 0 : vector<2x64xf32>, vector<2x64xf32>, vector<2x64xf32>, vector<2x64xf32> -> vector<8x64xf32>
      %108 = arith.index_cast %20 : i32 to index
      %c0_37 = arith.constant 0 : index
      %109 = vector.load %arg8[%108, %c0_37] : memref<200x64xf32, #tpu.memory_space<vmem>>, vector<8x64xf32>
      tpu.vector_store %arg8[%108, %c0_37], %107 {strides = array<i32>} : memref<200x64xf32, #tpu.memory_space<vmem>>, vector<8x64xf32>,
      scf.yield %106, %104 : vector<2x64xf32>, vector<2x64xf32>
    }
    %c25_i32_11 = arith.constant 25 : i32
    %c8 = arith.constant 8 : index
    %c0_12 = arith.constant 0 : index
    %12 = vector.load %arg8[%c8, %c0_12] : memref<200x64xf32, #tpu.memory_space<vmem>>, vector<192x64xf32>
    %c0_13 = arith.constant 0 : index
    %c0_14 = arith.constant 0 : index
    %13 = vector.load %arg4[%c0_13, %c0_14] : memref<64x1xf32, #tpu.memory_space<vmem>>, vector<64x1xf32>
    %cst_15 = arith.constant dense<0.000000e+00> : vector<192x1xf32>
    %14 = tpu.matmul %12, %13, %cst_15 {dimension_numbers = #tpu.dot_dimension_numbers<[1], [0], [0], [1], [0, 0, 1, 1], [], []>} : vector<192x64xf32>, vector<64x1xf32>, vector<192x1xf32> -> vector<192x1xf32>
    %c0_16 = arith.constant 0 : index
    %c0_17 = arith.constant 0 : index
    %15 = vector.load %arg5[%c0_16, %c0_17] : memref<1x1xf32, #tpu.memory_space<vmem>>, vector<1x1xf32>
    %16 = vector.broadcast %15 : vector<1x1xf32> to vector<192x1xf32>
    %17 = arith.addf %14, %16 : vector<192x1xf32>
    %c0_18 = arith.constant 0 : index
    %c0_19 = arith.constant 0 : index
    %18 = vector.load %arg6[%c0_18, %c0_19] : memref<192x1xf32, #tpu.memory_space<vmem>>, vector<192x1xf32>
    tpu.vector_store %arg6[%c0_18, %c0_19], %17 {strides = array<i32>} : memref<192x1xf32, #tpu.memory_space<vmem>>, vector<192x1xf32>,
    return
  }
}

</mosaic_0001>

<bundles_post_ra>
// kernel: lstm_net_forward.1
= control target key start
LH: loop header
LB: loop body
LE: loop exit
PB: predicated region body
PF: predicated region fallthrough
CT: control target
= control target key end

     0   :  { %vm142_vm0 = vcmask 1045504   ;;  %vm1560_vm1 = vmmov 1   ;;  %v1561_v3 = vmov 0.0   ;;  %vm66_vm3 = vcmask 113664   ;;  %s2163_s1 = inlined_call_operand.vmem [shape: f32[14,256], index: 1, kind: input, shape index: {}]   ;;  %s2164_s4 = inlined_call_operand.vmem [shape: f32[64,1], index: 4, kind: input, shape index: {}]   ;;  %s2165_s5 = inlined_call_operand.<no memory space> [shape: f32[1,1], index: 5, kind: input, shape index: {}]   ;;  %s2166_s6 = inlined_call_operand.vmem [shape: f32[192,1], index: 6, kind: output, shape index: {}]   ;;  %s2167_s0 = inlined_call_operand.vmem [shape: f32[200,14], index: 0, kind: input, shape index: {}]   ;;  %s2168_s2 = inlined_call_operand.vmem [shape: f32[64,256], index: 2, kind: input, shape index: {}]   ;;  %s2169_s3 = inlined_call_operand.vmem [shape: f32[1,256], index: 3, kind: input, shape index: {}]  }
   0x1   :  { %v11_v0 = vstv %s2165_s5  ;;  %v51_v1 = vld [vmem:[%s2163_s1 + $0x8] sm:$0xff]  ;;  %v53_v2 = vld [vmem:[%s2163_s1 + $0x18] sm:$0x3f]  ;;  %vm1381_vm2 = vmpackc.low %vm142_vm0, %vm1560_vm1  ;;  %213 = vmatprep.mubr.f32.mxu0 %v1561_v3  ;;  %291 = vmatprep.mubr.f32.mxu1 %v1561_v3  ;;  %v56_v49 = vlaneseq }
   0x2   :  { %12 = vst [vmem:[#allocation4] sm:$0x1] %v11_v0  ;;  %v1380_v4 = vpack.c.bf16 %v53_v2, %v51_v1  ;;  %v50_v5 = vld [vmem:[%s2163_s1] sm:$0xff]  ;;  %v52_v6 = vld [vmem:[%s2163_s1 + $0x10] sm:$0x3f]  ;;  %v38_v9 = vld [vmem:[%s2167_s0 + $0x68] sm:$0xff] }
   0x3   :  { %v1383_v7 = vpack.c.bf16 %v52_v6, %v50_v5  ;;  %v25_v8 = vld [vmem:[%s2167_s0] sm:$0xff]  ;;  %v26_v10 = vld [vmem:[%s2167_s0 + $0x8] sm:$0xff]  ;;  %v39_v11 = vld [vmem:[%s2167_s0 + $0x70] sm:$0xff]  ;;  %v57_v50 = vshrl.u32 %v56_v49, 7 }
   0x4   :  { %1382 = vmatprep.subr.msk.bf16.mxu0 %vm1381_vm2, %v1380_v4  ;;  %1466 = vmatprep.subr.msk.bf16.mxu1 %vm1381_vm2, %v1380_v4  ;;  %v27_v12 = vld [vmem:[%s2167_s0 + $0x10] sm:$0xff]  ;;  %v40_v13 = vld [vmem:[%s2167_s0 + $0x78] sm:$0xff]  ;;  %v41_v15 = vld [vmem:[%s2167_s0 + $0x80] sm:$0xff] }
   0x5   :  { %1385 = vmatpush1.bf16.msk.msra.mxu0 %vm1381_vm2, %v1383_v7  ;;  %1467 = vmatpush1.bf16.msk.msra.mxu1 %vm1381_vm2, %v1383_v7  ;;  %v28_v14 = vld [vmem:[%s2167_s0 + $0x18] sm:$0xff]  ;;  %v29_v16 = vld [vmem:[%s2167_s0 + $0x20] sm:$0xff]  ;;  %v42_v17 = vld [vmem:[%s2167_s0 + $0x88] sm:$0xff]  ;;  %v58_v51 = vsub.s32 0, %v57_v50  ;;  %v62_v53 = vsub.s32 1, %v57_v50 }
   0x6   :  { %v30_v18 = vld [vmem:[%s2167_s0 + $0x28] sm:$0xff]  ;;  %v43_v19 = vld [vmem:[%s2167_s0 + $0x90] sm:$0xff]  ;;  %v44_v21 = vld [vmem:[%s2167_s0 + $0x98] sm:$0xff] }
   0x7   :  { %v31_v20 = vld [vmem:[%s2167_s0 + $0x30] sm:$0xff]  ;;  %v32_v22 = vld [vmem:[%s2167_s0 + $0x38] sm:$0xff]  ;;  %v45_v23 = vld [vmem:[%s2167_s0 + $0xa0] sm:$0xff] }
   0x8   :  { %1238 = vmatmul.mubr.msk.f32.vlgmr.msra.gmra.mrb[0].mxu0 %vm66_vm3, %v25_v8  ;;  %1251 = vmatmul.mubr.msk.f32.vlgmr.msra.gmra.mrb[0].mxu1 %vm66_vm3, %v38_v9  ;;  %v33_v24 = vld [vmem:[%s2167_s0 + $0x40] sm:$0xff]  ;;  %v46_v25 = vld [vmem:[%s2167_s0 + $0xa8] sm:$0xff]  ;;  %v47_v27 = vld [vmem:[%s2167_s0 + $0xb0] sm:$0xff] }
   0x9   :  { %219 = vmatprep.mubr.f32.mxu0 %v1561_v3  ;;  %297 = vmatprep.mubr.f32.mxu1 %v1561_v3  ;;  %v34_v26 = vld [vmem:[%s2167_s0 + $0x48] sm:$0xff]  ;;  %v35_v28 = vld [vmem:[%s2167_s0 + $0x50] sm:$0xff]  ;;  %v48_v29 = vld [vmem:[%s2167_s0 + $0xb8] sm:$0xff] }
   0xa   :  { %v36_v30 = vld [vmem:[%s2167_s0 + $0x58] sm:$0xff]  ;;  %v49_v31 = vld [vmem:[%s2167_s0 + $0xc0] sm:$0xff]  ;;  %v1748_v34 = vld [vmem:[%s2168_s2 + $0x8] sm:$0xff] }
   0xb   :  { %v37_v32 = vld [vmem:[%s2167_s0 + $0x60] sm:$0xff]  ;;  %v1753_v35 = vld [vmem:[%s2168_s2 + $0x10] sm:$0xff]  ;;  %v1758_v36 = vld [vmem:[%s2168_s2 + $0x18] sm:$0xff] }
   0xc   :  { %1239 = vmatmul.mubr.msk.f32.gmra.mrb[2].mxu0 %vm66_vm3, %v26_v10  ;;  %1252 = vmatmul.mubr.msk.f32.gmra.mrb[2].mxu1 %vm66_vm3, %v39_v11  ;;  %v1743_v33 = vld [vmem:[%s2168_s2] sm:$0xff]  ;;  %v1768_v38 = vld [vmem:[%s2168_s2 + $0x28] sm:$0xff]  ;;  %v1773_v39 = vld [vmem:[%s2168_s2 + $0x30] sm:$0xff] }
   0xd   :  { %225 = vmatprep.mubr.f32.mxu0 %v1561_v3  ;;  %303 = vmatprep.mubr.f32.mxu1 %v1561_v3  ;;  %v1763_v37 = vld [vmem:[%s2168_s2 + $0x20] sm:$0xff]  ;;  %v1778_v40 = vld [vmem:[%s2168_s2 + $0x38] sm:$0xff]  ;;  %v1788_v42 = vld [vmem:[%s2168_s2 + $0x48] sm:$0xff] }
   0xe   :  { %v1783_v41 = vld [vmem:[%s2168_s2 + $0x40] sm:$0xff]  ;;  %v1793_v43 = vld [vmem:[%s2168_s2 + $0x50] sm:$0xff]  ;;  %v1798_v44 = vld [vmem:[%s2168_s2 + $0x58] sm:$0xff] }
   0xf   :  { %v1803_v45 = vld [vmem:[%s2168_s2 + $0x60] sm:$0xff]  ;;  %v1808_v46 = vld [vmem:[%s2168_s2 + $0x68] sm:$0xff]  ;;  %v1813_v47 = vld [vmem:[%s2168_s2 + $0x70] sm:$0xff] }
  0x10   :  { %1240 = vmatmul.mubr.msk.f32.gmra.mrb[4].mxu0 %vm66_vm3, %v27_v12  ;;  %1253 = vmatmul.mubr.msk.f32.gmra.mrb[4].mxu1 %vm66_vm3, %v40_v13  ;;  %v1818_v48 = vld [vmem:[%s2168_s2 + $0x78] sm:$0xff]  ;;  %v54_v52 = vld [vmem:[%s2169_s3] sm:$0x3]  ;;  %s1881_s2 = smov 0  }
  0x11   :  { %231 = vmatprep.mubr.f32.mxu0 %v1561_v3  ;;  %309 = vmatprep.mubr.f32.mxu1 %v1561_v3  ;;  %v1823_v54 = vrot.slane %v54_v52, %v58_v51  ;;  %v1825_v55 = vrot.slane %v54_v52, %v62_v53 }
  0x14   :  { %1241 = vmatmul.mubr.msk.f32.gmra.mrb[6].mxu0 %vm66_vm3, %v28_v14  ;;  %1254 = vmatmul.mubr.msk.f32.gmra.mrb[6].mxu1 %vm66_vm3, %v41_v15 }
  0x15   :  { %237 = vmatprep.mubr.f32.mxu0 %v1561_v3  ;;  %315 = vmatprep.mubr.f32.mxu1 %v1561_v3 }
  0x18   :  { %1242 = vmatmul.mubr.msk.f32.gmra.mrb[8].mxu0 %vm66_vm3, %v29_v16  ;;  %1255 = vmatmul.mubr.msk.f32.gmra.mrb[8].mxu1 %vm66_vm3, %v42_v17 }
  0x19   :  { %243 = vmatprep.mubr.f32.mxu0 %v1561_v3  ;;  %321 = vmatprep.mubr.f32.mxu1 %v1561_v3 }
  0x1c   :  { %1243 = vmatmul.mubr.msk.f32.gmra.mrb[10].mxu0 %vm66_vm3, %v30_v18  ;;  %1256 = vmatmul.mubr.msk.f32.gmra.mrb[10].mxu1 %vm66_vm3, %v43_v19 }
  0x1d   :  { %249 = vmatprep.mubr.f32.mxu0 %v1561_v3  ;;  %327 = vmatprep.mubr.f32.mxu1 %v1561_v3 }
  0x20   :  { %1244 = vmatmul.mubr.msk.f32.gmra.mrb[12].mxu0 %vm66_vm3, %v31_v20  ;;  %1257 = vmatmul.mubr.msk.f32.gmra.mrb[12].mxu1 %vm66_vm3, %v44_v21 }
  0x21   :  { %255 = vmatprep.mubr.f32.mxu0 %v1561_v3  ;;  %333 = vmatprep.mubr.f32.mxu1 %v1561_v3 }
  0x24   :  { %1245 = vmatmul.mubr.msk.f32.gmra.mrb[14].mxu0 %vm66_vm3, %v32_v22  ;;  %1258 = vmatmul.mubr.msk.f32.gmra.mrb[14].mxu1 %vm66_vm3, %v45_v23 }
  0x25   :  { %261 = vmatprep.mubr.f32.mxu0 %v1561_v3  ;;  %339 = vmatprep.mubr.f32.mxu1 %v1561_v3 }
  0x28   :  { %1246 = vmatmul.mubr.msk.f32.gmra.mrb[16].mxu0 %vm66_vm3, %v33_v24  ;;  %1259 = vmatmul.mubr.msk.f32.gmra.mrb[16].mxu1 %vm66_vm3, %v46_v25 }
  0x29   :  { %267 = vmatprep.mubr.f32.mxu0 %v1561_v3  ;;  %345 = vmatprep.mubr.f32.mxu1 %v1561_v3 }
  0x2c   :  { %1247 = vmatmul.mubr.msk.f32.gmra.mrb[18].mxu0 %vm66_vm3, %v34_v26  ;;  %1260 = vmatmul.mubr.msk.f32.gmra.mrb[18].mxu1 %vm66_vm3, %v47_v27 }
  0x2d   :  { %273 = vmatprep.mubr.f32.mxu0 %v1561_v3  ;;  %351 = vmatprep.mubr.f32.mxu1 %v1561_v3 }
  0x30   :  { %1248 = vmatmul.mubr.msk.f32.gmra.mrb[20].mxu0 %vm66_vm3, %v35_v28  ;;  %1261 = vmatmul.mubr.msk.f32.gmra.mrb[20].mxu1 %vm66_vm3, %v48_v29 }
  0x31   :  { %279 = vmatprep.mubr.f32.mxu0 %v1561_v3  ;;  %357 = vmatprep.mubr.f32.mxu1 %v1561_v3 }
  0x34   :  { %1249 = vmatmul.mubr.msk.f32.gmra.mrb[22].mxu0 %vm66_vm3, %v36_v30  ;;  %1262 = vmatmul.mubr.msk.f32.gmra.mrb[22].mxu1 %vm66_vm3, %v49_v31 }
  0x35   :  { %285 = vmatprep.mubr.f32.mxu0 %v1561_v3 }
  0x38   :  { %1250 = vmatmul.mubr.msk.f32.gmra.mrb[24].mxu0 %vm66_vm3, %v37_v32 }
  0xdb   :  { %v215_v56 = vpop.f32.mrb[0].mxu0  ;;  %v293_v57 = vpop.f32.mrb[0].mxu1 }
  0xdc   :  { %v216_v58 = vadd.f32 %v215_v56, %v1823_v54  ;;  %v217_v59 = vpop.f32.mrb[1].mxu0  ;;  %v294_v60 = vadd.f32 %v293_v57, %v1823_v54  ;;  %v295_v61 = vpop.f32.mrb[1].mxu1 }
  0xdd   :  { %v218_v62 = vadd.f32 %v217_v59, %v1825_v55  ;;  %v296_v63 = vadd.f32 %v295_v61, %v1825_v55 }
  0xde   :  { %364 = vst [vmem:[#allocation2] sm:$0xff] %v216_v58  ;;  %390 = vst [vmem:[#allocation2 + $0xd0] sm:$0xff] %v294_v60 }
  0xdf   :  { %365 = vst [vmem:[#allocation2 + $0x8] sm:$0xff] %v218_v62  ;;  %v221_v0 = vpop.f32.mrb[2].mxu0  ;;  %391 = vst [vmem:[#allocation2 + $0xd8] sm:$0xff] %v296_v63  ;;  %v299_v1 = vpop.f32.mrb[2].mxu1 }
  0xe0   :  { %v222_v2 = vadd.f32 %v221_v0, %v1823_v54  ;;  %v223_v3 = vpop.f32.mrb[3].mxu0  ;;  %v300_v4 = vadd.f32 %v299_v1, %v1823_v54  ;;  %v301_v5 = vpop.f32.mrb[3].mxu1 }
  0xe1   :  { %v224_v6 = vadd.f32 %v223_v3, %v1825_v55  ;;  %v302_v7 = vadd.f32 %v301_v5, %v1825_v55 }
  0xe2   :  { %366 = vst [vmem:[#allocation2 + $0x10] sm:$0xff] %v222_v2  ;;  %392 = vst [vmem:[#allocation2 + $0xe0] sm:$0xff] %v300_v4 }
  0xe3   :  { %367 = vst [vmem:[#allocation2 + $0x18] sm:$0xff] %v224_v6  ;;  %v227_v8 = vpop.f32.mrb[4].mxu0  ;;  %393 = vst [vmem:[#allocation2 + $0xe8] sm:$0xff] %v302_v7  ;;  %v305_v9 = vpop.f32.mrb[4].mxu1 }
  0xe4   :  { %v228_v10 = vadd.f32 %v227_v8, %v1823_v54  ;;  %v229_v11 = vpop.f32.mrb[5].mxu0  ;;  %v306_v12 = vadd.f32 %v305_v9, %v1823_v54  ;;  %v307_v13 = vpop.f32.mrb[5].mxu1 }
  0xe5   :  { %v230_v14 = vadd.f32 %v229_v11, %v1825_v55  ;;  %v308_v15 = vadd.f32 %v307_v13, %v1825_v55 }
  0xe6   :  { %368 = vst [vmem:[#allocation2 + $0x20] sm:$0xff] %v228_v10  ;;  %394 = vst [vmem:[#allocation2 + $0xf0] sm:$0xff] %v306_v12 }
  0xe7   :  { %369 = vst [vmem:[#allocation2 + $0x28] sm:$0xff] %v230_v14  ;;  %v233_v16 = vpop.f32.mrb[6].mxu0  ;;  %395 = vst [vmem:[#allocation2 + $0xf8] sm:$0xff] %v308_v15  ;;  %v311_v17 = vpop.f32.mrb[6].mxu1 }
  0xe8   :  { %v234_v18 = vadd.f32 %v233_v16, %v1823_v54  ;;  %v235_v19 = vpop.f32.mrb[7].mxu0  ;;  %v312_v20 = vadd.f32 %v311_v17, %v1823_v54  ;;  %v313_v21 = vpop.f32.mrb[7].mxu1 }
  0xe9   :  { %v236_v22 = vadd.f32 %v235_v19, %v1825_v55  ;;  %v314_v23 = vadd.f32 %v313_v21, %v1825_v55 }
  0xea   :  { %370 = vst [vmem:[#allocation2 + $0x30] sm:$0xff] %v234_v18  ;;  %396 = vst [vmem:[#allocation2 + $0x100] sm:$0xff] %v312_v20 }
  0xeb   :  { %371 = vst [vmem:[#allocation2 + $0x38] sm:$0xff] %v236_v22  ;;  %v239_v24 = vpop.f32.mrb[8].mxu0  ;;  %397 = vst [vmem:[#allocation2 + $0x108] sm:$0xff] %v314_v23  ;;  %v317_v25 = vpop.f32.mrb[8].mxu1 }
  0xec   :  { %v240_v26 = vadd.f32 %v239_v24, %v1823_v54  ;;  %v241_v27 = vpop.f32.mrb[9].mxu0  ;;  %v318_v28 = vadd.f32 %v317_v25, %v1823_v54  ;;  %v319_v29 = vpop.f32.mrb[9].mxu1 }
  0xed   :  { %v242_v30 = vadd.f32 %v241_v27, %v1825_v55  ;;  %v320_v31 = vadd.f32 %v319_v29, %v1825_v55 }
  0xee   :  { %372 = vst [vmem:[#allocation2 + $0x40] sm:$0xff] %v240_v26  ;;  %398 = vst [vmem:[#allocation2 + $0x110] sm:$0xff] %v318_v28 }
  0xef   :  { %373 = vst [vmem:[#allocation2 + $0x48] sm:$0xff] %v242_v30  ;;  %v245_v32 = vpop.f32.mrb[10].mxu0  ;;  %399 = vst [vmem:[#allocation2 + $0x118] sm:$0xff] %v320_v31  ;;  %v323_v49 = vpop.f32.mrb[10].mxu1 }
  0xf0   :  { %v246_v50 = vadd.f32 %v245_v32, %v1823_v54  ;;  %v247_v51 = vpop.f32.mrb[11].mxu0  ;;  %v324_v52 = vadd.f32 %v323_v49, %v1823_v54  ;;  %v325_v53 = vpop.f32.mrb[11].mxu1 }
  0xf1   :  { %v248_v56 = vadd.f32 %v247_v51, %v1825_v55  ;;  %v326_v57 = vadd.f32 %v325_v53, %v1825_v55 }
  0xf2   :  { %374 = vst [vmem:[#allocation2 + $0x50] sm:$0xff] %v246_v50  ;;  %400 = vst [vmem:[#allocation2 + $0x120] sm:$0xff] %v324_v52 }
  0xf3   :  { %375 = vst [vmem:[#allocation2 + $0x58] sm:$0xff] %v248_v56  ;;  %v251_v58 = vpop.f32.mrb[12].mxu0  ;;  %401 = vst [vmem:[#allocation2 + $0x128] sm:$0xff] %v326_v57  ;;  %v329_v59 = vpop.f32.mrb[12].mxu1 }
  0xf4   :  { %v252_v60 = vadd.f32 %v251_v58, %v1823_v54  ;;  %v253_v61 = vpop.f32.mrb[13].mxu0  ;;  %v330_v62 = vadd.f32 %v329_v59, %v1823_v54  ;;  %v331_v63 = vpop.f32.mrb[13].mxu1 }
  0xf5   :  { %v254_v0 = vadd.f32 %v253_v61, %v1825_v55  ;;  %v332_v1 = vadd.f32 %v331_v63, %v1825_v55 }
  0xf6   :  { %376 = vst [vmem:[#allocation2 + $0x60] sm:$0xff] %v252_v60  ;;  %402 = vst [vmem:[#allocation2 + $0x130] sm:$0xff] %v330_v62 }
  0xf7   :  { %377 = vst [vmem:[#allocation2 + $0x68] sm:$0xff] %v254_v0  ;;  %v257_v2 = vpop.f32.mrb[14].mxu0  ;;  %403 = vst [vmem:[#allocation2 + $0x138] sm:$0xff] %v332_v1  ;;  %v335_v3 = vpop.f32.mrb[14].mxu1  ;;  %v1877_v0 = vmov 0.0   ;;  %v1879_v1 = vmov 0.0  }
  0xf8   :  { %v258_v4 = vadd.f32 %v257_v2, %v1823_v54  ;;  %v259_v5 = vpop.f32.mrb[15].mxu0  ;;  %v336_v6 = vadd.f32 %v335_v3, %v1823_v54  ;;  %v337_v7 = vpop.f32.mrb[15].mxu1 }
  0xf9   :  { %v260_v8 = vadd.f32 %v259_v5, %v1825_v55  ;;  %v338_v9 = vadd.f32 %v337_v7, %v1825_v55 }
  0xfa   :  { %378 = vst [vmem:[#allocation2 + $0x70] sm:$0xff] %v258_v4  ;;  %404 = vst [vmem:[#allocation2 + $0x140] sm:$0xff] %v336_v6 }
  0xfb   :  { %379 = vst [vmem:[#allocation2 + $0x78] sm:$0xff] %v260_v8  ;;  %v263_v10 = vpop.f32.mrb[16].mxu0  ;;  %405 = vst [vmem:[#allocation2 + $0x148] sm:$0xff] %v338_v9  ;;  %v341_v11 = vpop.f32.mrb[16].mxu1 }
  0xfc   :  { %v264_v12 = vadd.f32 %v263_v10, %v1823_v54  ;;  %v265_v13 = vpop.f32.mrb[17].mxu0  ;;  %v342_v14 = vadd.f32 %v341_v11, %v1823_v54  ;;  %v343_v15 = vpop.f32.mrb[17].mxu1 }
  0xfd   :  { %v266_v16 = vadd.f32 %v265_v13, %v1825_v55  ;;  %v344_v17 = vadd.f32 %v343_v15, %v1825_v55 }
  0xfe   :  { %380 = vst [vmem:[#allocation2 + $0x80] sm:$0xff] %v264_v12  ;;  %406 = vst [vmem:[#allocation2 + $0x150] sm:$0xff] %v342_v14 }
  0xff   :  { %381 = vst [vmem:[#allocation2 + $0x88] sm:$0xff] %v266_v16  ;;  %v269_v18 = vpop.f32.mrb[18].mxu0  ;;  %407 = vst [vmem:[#allocation2 + $0x158] sm:$0xff] %v344_v17  ;;  %v347_v19 = vpop.f32.mrb[18].mxu1 }
 0x100   :  { %v270_v20 = vadd.f32 %v269_v18, %v1823_v54  ;;  %v271_v21 = vpop.f32.mrb[19].mxu0  ;;  %v348_v22 = vadd.f32 %v347_v19, %v1823_v54  ;;  %v349_v23 = vpop.f32.mrb[19].mxu1 }
 0x101   :  { %v272_v24 = vadd.f32 %v271_v21, %v1825_v55  ;;  %v350_v25 = vadd.f32 %v349_v23, %v1825_v55 }
 0x102   :  { %382 = vst [vmem:[#allocation2 + $0x90] sm:$0xff] %v270_v20  ;;  %408 = vst [vmem:[#allocation2 + $0x160] sm:$0xff] %v348_v22 }
 0x103   :  { %383 = vst [vmem:[#allocation2 + $0x98] sm:$0xff] %v272_v24  ;;  %v275_v26 = vpop.f32.mrb[20].mxu0  ;;  %409 = vst [vmem:[#allocation2 + $0x168] sm:$0xff] %v350_v25  ;;  %v353_v27 = vpop.f32.mrb[20].mxu1 }
 0x104   :  { %v276_v28 = vadd.f32 %v275_v26, %v1823_v54  ;;  %v277_v29 = vpop.f32.mrb[21].mxu0  ;;  %v354_v30 = vadd.f32 %v353_v27, %v1823_v54  ;;  %v355_v31 = vpop.f32.mrb[21].mxu1 }
 0x105   :  { %v278_v32 = vadd.f32 %v277_v29, %v1825_v55  ;;  %v356_v49 = vadd.f32 %v355_v31, %v1825_v55 }
 0x106   :  { %384 = vst [vmem:[#allocation2 + $0xa0] sm:$0xff] %v276_v28  ;;  %410 = vst [vmem:[#allocation2 + $0x170] sm:$0xff] %v354_v30 }
 0x107   :  { %385 = vst [vmem:[#allocation2 + $0xa8] sm:$0xff] %v278_v32  ;;  %v281_v50 = vpop.f32.mrb[22].mxu0  ;;  %411 = vst [vmem:[#allocation2 + $0x178] sm:$0xff] %v356_v49  ;;  %v359_v51 = vpop.f32.mrb[22].mxu1 }
 0x108   :  { %v282_v52 = vadd.f32 %v281_v50, %v1823_v54  ;;  %v283_v53 = vpop.f32.mrb[23].mxu0  ;;  %v360_v56 = vadd.f32 %v359_v51, %v1823_v54  ;;  %v361_v57 = vpop.f32.mrb[23].mxu1 }
 0x109   :  { %v284_v58 = vadd.f32 %v283_v53, %v1825_v55  ;;  %v362_v59 = vadd.f32 %v361_v57, %v1825_v55 }
 0x10a   :  { %386 = vst [vmem:[#allocation2 + $0xb0] sm:$0xff] %v282_v52  ;;  %412 = vst [vmem:[#allocation2 + $0x180] sm:$0xff] %v360_v56 }
 0x10b   :  { %387 = vst [vmem:[#allocation2 + $0xb8] sm:$0xff] %v284_v58  ;;  %v287_v60 = vpop.f32.mrb[24].mxu0  ;;  %413 = vst [vmem:[#allocation2 + $0x188] sm:$0xff] %v362_v59 }
 0x10c   :  { %v288_v61 = vadd.f32 %v287_v60, %v1823_v54  ;;  %v289_v62 = vpop.f32.mrb[25].mxu0 }
 0x10d   :  { %v290_v63 = vadd.f32 %v289_v62, %v1825_v55 }
 0x10e   :  { %388 = vst [vmem:[#allocation2 + $0xc0] sm:$0xff] %v288_v61 }
 0x10f   :  { %389 = vst [vmem:[#allocation2 + $0xc8] sm:$0xff] %v290_v63 }
 0x110 LB: > { %v1386_v54 = vpack.c.bf16 %v1758_v36, %v1748_v34  ;;  %v1894_v55 = vpack.c.bf16 %v1753_v35, %v1743_v33  ;;  %v1898_v2 = vpack.c.bf16 %v1778_v40, %v1768_v38  ;;  %v1903_v3 = vpack.c.bf16 %v1773_v39, %v1763_v37  ;;  %s1263_s3 = sshll.u32 %s1558_s2, 3  ;;  %s1563_s12 = smov 64   ;;  %s1558_s2 = sphi %s1881_s2, %s435_s2   ;;  %v1554_v1 = vphi %v1879_v1, %v887_v1   ;;  %v1550_v0 = vphi %v1877_v0, %v881_v0  }
 0x111   : > { %v1562_v4 = vmov 0.0   ;;  %v1909_v5 = vpack.c.bf16 %v1798_v44, %v1788_v42  ;;  %v1917_v6 = vpack.c.bf16 %v1793_v43, %v1783_v41  ;;  %v1922_v7 = vpack.c.bf16 %v1818_v48, %v1808_v46  ;;  %s439_s10 = sshra.s32 %s1263_s3, 3  ;;  %s893_s13 = scalar_lea.vmem [#allocation3], %s1263_s3 }
 0x112   : > { %1387 = vmatprep.subr.bf16.mxu0 %v1386_v54  ;;  %1403 = vmatprep.subr.bf16.mxu1 %v1386_v54  ;;  %v1400_v8 = vpack.c.bf16 %v1813_v47, %v1803_v45  ;;  %v447_v9 = vrot.slane %v1554_v1, 6  ;;  %vm448_vm4 = vcmask 523264   ;;  %s1295_s0 = sshll.u32 %s439_s10, 4  ;;  %v534_v23 = vrot.slane %v1550_v0, 6  ;;  %s435_s2 = sadd.s32 1, %s1558_s2  }
 0x113   : > { %1389 = vmatpush1.bf16.msra.mxu0 %v1894_v55  ;;  %515 = vmatprep.mubr.f32.mxu0 %v1562_v4  ;;  %s443_s11 = scalar_lea.vmem [#allocation2], %s1295_s0  ;;  %vm888_vm5 = vcmask 1041408   ;;  %vm890_vm6 = vcmask 1043456   ;;  %p432_p0 = scmp.ge.s32.totalorder %s435_s2, 25  }
 0x114   : > { %1391 = vmatprep.subr.bf16.mxu0 %v1898_v2  ;;  %1405 = vmatpush1.bf16.msra.mxu1 %v1894_v55  ;;  %v923_v33 = vld [vmem:[%s2164_s4 + $0x20] sm:$0xff] (%p432_p0)  ;;  %v924_v34 = vld [vmem:[%s2164_s4 + $0x28] sm:$0xff] (%p432_p0)  ;;  %v925_v38 = vld [vmem:[%s2164_s4 + $0x30] sm:$0xff] (%p432_p0)  ;;  %vm1192_vm7 = vcmask (%p432_p0), 7168  }
 0x115   : > { %1407 = vmatprep.subr.bf16.mxu1 %v1898_v2  ;;  %620 = vmatprep.mubr.f32.mxu1 %v1562_v4  ;;  %v1458_v37 = vpack.c.bf16 (%p432_p0), %v924_v34, %v923_v33  ;;  %v926_v39 = vld [vmem:[%s2164_s4 + $0x38] sm:$0xff] (%p432_p0) }
 0x116   : > { %v1943_v10 = vld [vmem:[%s443_s11 + $0x8] sm:$0xff]  ;;  %v1947_v15 = vld [vmem:[%s443_s11] sm:$0xff]  ;;  %v1462_v40 = vpack.c.bf16 (%p432_p0), %v926_v39, %v925_v38 }
 0x117   : > { %1393 = vmatpush1.bf16.msra.mxu0 %v1903_v3 }
 0x118   : > { %1395 = vmatprep.subr.bf16.mxu0 %v1909_v5  ;;  %1409 = vmatpush1.bf16.msra.mxu1 %v1903_v3 }
 0x119   : > { %1411 = vmatprep.subr.bf16.mxu1 %v1909_v5 }
 0x11b   : > { %1397 = vmatpush1.bf16.msra.mxu0 %v1917_v6 }
 0x11c   : > { %1399 = vmatprep.subr.bf16.mxu0 %v1922_v7  ;;  %1413 = vmatpush1.bf16.msra.mxu1 %v1917_v6 }
 0x11d   : > { %1415 = vmatprep.subr.bf16.mxu1 %v1922_v7 }
 0x11f   : > { %1401 = vmatpush1.bf16.msra.mxu0 %v1400_v8 }
 0x120   : > { %1417 = vmatpush1.bf16.msra.mxu1 %v1400_v8  ;;  %1419 = vmatprep.subr.bf16.mxu0 %v1386_v54 }
 0x121   : > { %1435 = vmatprep.subr.bf16.mxu1 %v1386_v54 }
 0x122   : > { %1266 = vmatmul.mubr.msk.f32.vlgmr.msra.gmra.mrb[0].mxu0 %vm448_vm4, %v447_v9 }
 0x123   : > { %1421 = vmatpush1.bf16.msra.mxu0 %v1894_v55  ;;  %732 = vmatprep.mubr.f32.mxu0 %v1562_v4 }
 0x124   : > { %1423 = vmatprep.subr.bf16.mxu0 %v1898_v2 }
 0x127   : > { %1425 = vmatpush1.bf16.msra.mxu0 %v1903_v3 }
 0x128   : > { %1427 = vmatprep.subr.bf16.mxu0 %v1909_v5 }
 0x12b   : > { %1429 = vmatpush1.bf16.msra.mxu0 %v1917_v6 }
 0x12c   : > { %1431 = vmatprep.subr.bf16.mxu0 %v1922_v7 }
 0x12f   : > { %1433 = vmatpush1.bf16.msra.mxu0 %v1400_v8 }
 0x1f5   : > { %v517_v11 = vpop.f32.mrb[0].mxu0 }
 0x1f6   : > { %v519_v12 = vpop.f32.mrb[1].mxu0  ;;  %v522_v16 = vadd.f32 %v517_v11, %v1947_v15 }
 0x1f7   : > { %v523_v13 = vadd.f32 %v519_v12, %v1943_v10 }
 0x1f8   : > { %v524_v17 = vmul.f32 0.5, %v522_v16 }
 0x1f9   : > { %1504 = vtanh.f32 %v523_v13  ;;  %v525_v28 = vmul.f32 0.5, %v523_v13 }
 0x1fa   : > { %1506 = vtanh.f32 %v524_v17 }
 0x203   : > { %v1505_v14 = vpop.eup %1504 }
 0x204   : > { %538 = vrot.lane.b32.xlu0 %v1505_v14, %s1563_s12  ;;  %v1507_v18 = vpop.eup %1506 }
 0x205   : > { %v528_v19 = vmul.f32 0.5, %v1507_v18 }
 0x207   : > { %v530_v20 = vadd.f32 0.5, %v528_v19 }
 0x209   : > { %v536_v24 = vmul.f32 %v534_v23, %v530_v20 }
 0x276   : > { %v539_v21 = vpop.permute.xlu0 %538 }
 0x277   : > { %v541_v22 = vmul.f32 %v539_v21, %v530_v20 }
 0x279   : > { %543 = vrot.lane.b32.xlu0 %v541_v22, %s1563_s12 }
 0x2eb   : > { %v544_v25 = vpop.permute.xlu0 %543 }
 0x2ec   : > { %v546_v26 = vadd.f32 %v544_v25, %v536_v24 }
 0x2ee   : > { %1508 = vtanh.f32 %v546_v26  ;;  %v645_v1 = vrot.slane %v546_v26, 6 }
 0x2ef   : > { %1510 = vtanh.f32 %v525_v28 }
 0x2f8   : > { %v1509_v27 = vpop.eup %1508 }
 0x2f9   : > { %549 = vrot.lane.b32.xlu1 %v1509_v27, %s1563_s12  ;;  %v1511_v29 = vpop.eup %1510 }
 0x2fa   : > { %v529_v30 = vmul.f32 0.5, %v1511_v29 }
 0x2fc   : > { %v531_v31 = vadd.f32 0.5, %v529_v30 }
 0x36b   : > { %v550_v32 = vpop.permute.xlu1 %549 }
 0x36c   : > { %v1953_v49 = vmul.f32 %v550_v32, %v531_v31 }
 0x36e   : > { %1267 = vmatmul.mubr.msk.f32.vlgmr.msra.gmra.mrb[0].mxu1 %vm448_vm4, %v1953_v49 }
 0x36f   : > { %1437 = vmatpush1.bf16.msra.mxu1 %v1894_v55  ;;  %844 = vmatprep.mubr.f32.mxu1 %v1562_v4 }
 0x370   : > { %1439 = vmatprep.subr.bf16.mxu1 %v1898_v2 }
 0x373   : > { %1441 = vmatpush1.bf16.msra.mxu1 %v1903_v3 }
 0x374   : > { %1443 = vmatprep.subr.bf16.mxu1 %v1909_v5 }
 0x377   : > { %1445 = vmatpush1.bf16.msra.mxu1 %v1917_v6 }
 0x378   : > { %1447 = vmatprep.subr.bf16.mxu1 %v1922_v7 }
 0x37b   : > { %1449 = vmatpush1.bf16.msra.mxu1 %v1400_v8 }
 0x441   : > { %v622_v50 = vpop.f32.mrb[0].mxu1 }
 0x442   : > { %v624_v51 = vpop.f32.mrb[1].mxu1  ;;  %v629_v57 = vrot.slane %v622_v50, 6 }
 0x443   : > { %v630_v52 = vrot.slane %v624_v51, 6 }
 0x444   : > { %v633_v58 = vadd.f32 %v629_v57, %v1947_v15 }
 0x445   : > { %v634_v53 = vadd.f32 %v630_v52, %v1943_v10 }
 0x446   : > { %v635_v59 = vmul.f32 0.5, %v633_v58 }
 0x447   : > { %1512 = vtanh.f32 %v634_v53  ;;  %v636_v4 = vmul.f32 0.5, %v634_v53 }
 0x448   : > { %1514 = vtanh.f32 %v635_v59 }
 0x451   : > { %v1513_v56 = vpop.eup %1512 }
 0x452   : > { %649 = vrot.lane.b32.xlu1 %v1513_v56, %s1563_s12  ;;  %v1515_v60 = vpop.eup %1514 }
 0x453   : > { %v639_v61 = vmul.f32 0.5, %v1515_v60 }
 0x455   : > { %v641_v62 = vadd.f32 0.5, %v639_v61 }
 0x457   : > { %v647_v54 = vmul.f32 %v645_v1, %v641_v62 }
 0x4c4   : > { %v650_v63 = vpop.permute.xlu1 %649 }
 0x4c5   : > { %v652_v0 = vmul.f32 %v650_v63, %v641_v62 }
 0x4c7   : > { %654 = vrot.lane.b32.xlu0 %v652_v0, %s1563_s12 }
 0x539   : > { %v655_v55 = vpop.permute.xlu0 %654 }
 0x53a   : > { %v657_v2 = vadd.f32 %v655_v55, %v647_v54 }
 0x53c   : > { %1516 = vtanh.f32 %v657_v2  ;;  %v757_v26 = vrot.slane %v657_v2, 6 }
 0x53d   : > { %1518 = vtanh.f32 %v636_v4 }
 0x546   : > { %v1517_v3 = vpop.eup %1516 }
 0x547   : > { %660 = vrot.lane.b32.xlu1 %v1517_v3, %s1563_s12  ;;  %v1519_v5 = vpop.eup %1518 }
 0x548   : > { %v640_v6 = vmul.f32 0.5, %v1519_v5 }
 0x54a   : > { %v642_v7 = vadd.f32 0.5, %v640_v6 }
 0x5b9   : > { %v661_v8 = vpop.permute.xlu1 %660 }
 0x5ba   : > { %v663_v9 = vmul.f32 %v661_v8, %v642_v7 }
 0x5bc   : > { %v665_v11 = vrot.slane %v663_v9, 2  ;;  %v889_v56 = vsel %vm888_vm5, %v1953_v49, %v663_v9 }
 0x5be   : > { %1268 = vmatmul.mubr.msk.f32.vlgmr.msra.gmra.mrb[2].mxu0 %vm448_vm4, %v665_v11 }
 0x691   : > { %v734_v12 = vpop.f32.mrb[2].mxu0 }
 0x692   : > { %v736_v13 = vpop.f32.mrb[3].mxu0  ;;  %v741_v18 = vrot.slane %v734_v12, 4 }
 0x693   : > { %v742_v14 = vrot.slane %v736_v13, 4 }
 0x694   : > { %v745_v19 = vadd.f32 %v741_v18, %v1947_v15 }
 0x695   : > { %v746_v16 = vadd.f32 %v742_v14, %v1943_v10  ;;  %v919_v14 = vld [vmem:[%s2164_s4] sm:$0xff] (%p432_p0) }
 0x696   : > { %v747_v20 = vmul.f32 0.5, %v745_v19  ;;  %v922_v19 = vld [vmem:[%s2164_s4 + $0x18] sm:$0xff] (%p432_p0) }
 0x697   : > { %1520 = vtanh.f32 %v746_v16  ;;  %v748_v31 = vmul.f32 0.5, %v746_v16  ;;  %v920_v16 = vld [vmem:[%s2164_s4 + $0x8] sm:$0xff] (%p432_p0) }
 0x698   : > { %1522 = vtanh.f32 %v747_v20  ;;  %v1450_v18 = vpack.c.bf16 (%p432_p0), %v920_v16, %v919_v14 }
 0x69a   :  { %1451 = vmatprep.subr.bf16.mxu0 (%p432_p0), %v1450_v18  ;;  %1468 = vmatprep.subr.bf16.mxu1 (%p432_p0), %v1450_v18 }
 0x69b   :  { %1453 = vmatpush3.bf16.msra.mxu0 (%p432_p0), %v1450_v18 }
 0x6a1   : > { %v1521_v17 = vpop.eup %1520 }
 0x6a2   : > { %761 = vrot.lane.b32.xlu0 %v1521_v17, %s1563_s12  ;;  %v1523_v21 = vpop.eup %1522  ;;  %v921_v17 = vld [vmem:[%s2164_s4 + $0x10] sm:$0xff] (%p432_p0) }
 0x6a3   : > { %v751_v22 = vmul.f32 0.5, %v1523_v21  ;;  %v1454_v20 = vpack.c.bf16 (%p432_p0), %v922_v19, %v921_v17 }
 0x6a5   : > { %v753_v23 = vadd.f32 0.5, %v751_v22  ;;  %1455 = vmatprep.subr.bf16.mxu0 (%p432_p0), %v1454_v20 }
 0x6a6   :  { %1457 = vmatpush3.bf16.msra.mxu0 (%p432_p0), %v1454_v20 }
 0x6a7   : > { %v759_v27 = vmul.f32 %v757_v26, %v753_v23  ;;  %1459 = vmatprep.subr.bf16.mxu0 (%p432_p0), %v1458_v37 }
 0x6aa   :  { %1461 = vmatpush3.bf16.msra.mxu0 (%p432_p0), %v1458_v37 }
 0x6ab   :  { %1463 = vmatprep.subr.bf16.mxu0 (%p432_p0), %v1462_v40 }
 0x6ae   :  { %1465 = vmatpush3.bf16.msra.mxu0 (%p432_p0), %v1462_v40 }
 0x714   : > { %v762_v24 = vpop.permute.xlu0 %761 }
 0x715   : > { %v764_v25 = vmul.f32 %v762_v24, %v753_v23 }
 0x717   : > { %766 = vrot.lane.b32.xlu1 %v764_v25, %s1563_s12 }
 0x789   : > { %v767_v28 = vpop.permute.xlu1 %766 }
 0x78a   : > { %v769_v29 = vadd.f32 %v767_v28, %v759_v27 }
 0x78c   : > { %1524 = vtanh.f32 %v769_v29  ;;  %v869_v5 = vrot.slane %v769_v29, 6 }
 0x78d   : > { %1526 = vtanh.f32 %v748_v31 }
 0x796   : > { %v1525_v30 = vpop.eup %1524 }
 0x797   : > { %772 = vrot.lane.b32.xlu0 %v1525_v30, %s1563_s12  ;;  %v1527_v32 = vpop.eup %1526 }
 0x798   : > { %v752_v50 = vmul.f32 0.5, %v1527_v32 }
 0x79a   : > { %v754_v51 = vadd.f32 0.5, %v752_v50 }
 0x809   : > { %v773_v52 = vpop.permute.xlu0 %772 }
 0x80a   : > { %v775_v53 = vmul.f32 %v773_v52, %v754_v51  ;;  %v2041_v52 = vld [vmem:[#allocation4] ss:$0 sm:$0xff] (%p432_p0) }
 0x80c   : > { %v777_v57 = vrot.slane %v775_v53, 4  ;;  %v891_v58 = vsel %vm890_vm6, %v889_v56, %v775_v53 }
 0x80e   : > { %1269 = vmatmul.mubr.msk.f32.vlgmr.msra.gmra.mrb[2].mxu1 %vm448_vm4, %v777_v57 }
 0x80f   :  { %1472 = vmatpush3.bf16.msra.mxu1 (%p432_p0), %v1450_v18 }
 0x810   :  { %1469 = vmatprep.subr.bf16.mxu1 (%p432_p0), %v1454_v20 }
 0x813   :  { %1473 = vmatpush3.bf16.msra.mxu1 (%p432_p0), %v1454_v20 }
 0x814   :  { %1470 = vmatprep.subr.bf16.mxu1 (%p432_p0), %v1458_v37 }
 0x817   :  { %1474 = vmatpush3.bf16.msra.mxu1 (%p432_p0), %v1458_v37 }
 0x818   :  { %1471 = vmatprep.subr.bf16.mxu1 (%p432_p0), %v1462_v40 }
 0x81b   :  { %1475 = vmatpush3.bf16.msra.mxu1 (%p432_p0), %v1462_v40 }
 0x8e1   : > { %v846_v59 = vpop.f32.mrb[2].mxu1 }
 0x8e2   : > { %v848_v60 = vpop.f32.mrb[3].mxu1  ;;  %v853_v0 = vrot.slane %v846_v59, 2 }
 0x8e3   : > { %v854_v61 = vrot.slane %v848_v60, 2 }
 0x8e4   : > { %v857_v1 = vadd.f32 %v853_v0, %v1947_v15 }
 0x8e5   : > { %v858_v62 = vadd.f32 %v854_v61, %v1943_v10 }
 0x8e6   : > { %v859_v54 = vmul.f32 0.5, %v857_v1 }
 0x8e7   : > { %1528 = vtanh.f32 %v858_v62  ;;  %v860_v8 = vmul.f32 0.5, %v858_v62 }
 0x8e8   : > { %1530 = vtanh.f32 %v859_v54 }
 0x8f1   : > { %v1529_v63 = vpop.eup %1528 }
 0x8f2   : > { %873 = vrot.lane.b32.xlu1 %v1529_v63, %s1563_s12  ;;  %v1531_v55 = vpop.eup %1530 }
 0x8f3   : > { %v863_v49 = vmul.f32 0.5, %v1531_v55 }
 0x8f5   : > { %v865_v2 = vadd.f32 0.5, %v863_v49 }
 0x8f7   : > { %v871_v6 = vmul.f32 %v869_v5, %v865_v2 }
 0x964   : > { %v874_v3 = vpop.permute.xlu1 %873 }
 0x965   : > { %v876_v4 = vmul.f32 %v874_v3, %v865_v2 }
 0x967   : > { %878 = vrot.lane.b32.xlu0 %v876_v4, %s1563_s12 }
 0x9d9   : > { %v879_v10 = vpop.permute.xlu0 %878 }
 0x9da   : > { %v881_v0 = vadd.f32 %v879_v10, %v871_v6  }
 0x9dc   : > { %1532 = vtanh.f32 %v881_v0 }
 0x9dd   : > { %1534 = vtanh.f32 %v860_v8 }
 0x9e6   : > { %v1533_v7 = vpop.eup %1532 }
 0x9e7   : > { %884 = vrot.lane.b32.xlu1 %v1533_v7, %s1563_s12  ;;  %v1535_v15 = vpop.eup %1534 }
 0x9e8   : > { %v864_v9 = vmul.f32 0.5, %v1535_v15 }
 0x9ea   : > { %v866_v11 = vadd.f32 0.5, %v864_v9 }
 0xa57   :  { %434 = sbr.rel (!%p432_p0) target bundleno = 272 (0x110), region = 53 }
 0xa59   : > { %v885_v12 = vpop.permute.xlu1 %884 }
 0xa5a   : > { %v887_v1 = vmul.f32 %v885_v12, %v866_v11  }
 0xa5c   : > { %v892_v13 = vsel %vm142_vm0, %v891_v58, %v887_v1 }
 0xa5d   : > { %894 = vst.msk [vmem:[%s893_s13] sm:$0xff] %vm448_vm4, %v892_v13 }
 0xa64   :  { %v895_v35 = vld [vmem:[#allocation3 + $0x8] sm:$0xff]  ;;  %v896_v41 = vld [vmem:[#allocation3 + $0x10] sm:$0xff]  ;;  %v897_v43 = vld [vmem:[#allocation3 + $0x18] sm:$0xff] }
 0xa65   :  { %v907_v36 = vld [vmem:[#allocation3 + $0x68] sm:$0xff]  ;;  %1344 = vmatprep.mubr.msk.f32.mxu0 %vm448_vm4, %v895_v35  ;;  %v908_v42 = vld [vmem:[#allocation3 + $0x70] sm:$0xff]  ;;  %v909_v44 = vld [vmem:[#allocation3 + $0x78] sm:$0xff] }
 0xa66   :  { %1362 = vmatprep.mubr.msk.f32.mxu1 %vm448_vm4, %v907_v36  ;;  %1345 = vmatmul.mubr.msk.f32.vlgmr.msra.gmra.mrb[0].mxu0 %vm448_vm4, %v896_v41  ;;  %v898_v45 = vld [vmem:[#allocation3 + $0x20] sm:$0xff]  ;;  %v899_v47 = vld [vmem:[#allocation3 + $0x28] sm:$0xff]  ;;  %v900_v21 = vld [vmem:[#allocation3 + $0x30] sm:$0xff] }
 0xa67   :  { %1363 = vmatmul.mubr.msk.f32.vlgmr.msra.gmra.mrb[0].mxu1 %vm448_vm4, %v908_v42  ;;  %1347 = vmatprep.mubr.msk.f32.mxu0 %vm448_vm4, %v897_v43  ;;  %v910_v46 = vld [vmem:[#allocation3 + $0x80] sm:$0xff]  ;;  %v911_v48 = vld [vmem:[#allocation3 + $0x88] sm:$0xff]  ;;  %v912_v22 = vld [vmem:[#allocation3 + $0x90] sm:$0xff] }
 0xa68   :  { %1365 = vmatprep.mubr.msk.f32.mxu1 %vm448_vm4, %v909_v44  ;;  %v901_v23 = vld [vmem:[#allocation3 + $0x38] sm:$0xff]  ;;  %v902_v25 = vld [vmem:[#allocation3 + $0x40] sm:$0xff]  ;;  %v903_v27 = vld [vmem:[#allocation3 + $0x48] sm:$0xff] }
 0xa69   :  { %v913_v24 = vld [vmem:[#allocation3 + $0x98] sm:$0xff]  ;;  %v914_v26 = vld [vmem:[#allocation3 + $0xa0] sm:$0xff]  ;;  %v915_v28 = vld [vmem:[#allocation3 + $0xa8] sm:$0xff] }
 0xa6a   :  { %1348 = vmatmul.mubr.msk.f32.gmra.mrb[2].mxu0 %vm448_vm4, %v898_v45  ;;  %v904_v29 = vld [vmem:[#allocation3 + $0x50] sm:$0xff]  ;;  %v905_v31 = vld [vmem:[#allocation3 + $0x58] sm:$0xff]  ;;  %v906_v50 = vld [vmem:[#allocation3 + $0x60] sm:$0xff] }
 0xa6b   :  { %1366 = vmatmul.mubr.msk.f32.gmra.mrb[2].mxu1 %vm448_vm4, %v910_v46  ;;  %1350 = vmatprep.mubr.msk.f32.mxu0 %vm448_vm4, %v899_v47  ;;  %v916_v30 = vld [vmem:[#allocation3 + $0xb0] sm:$0xff]  ;;  %v917_v32 = vld [vmem:[#allocation3 + $0xb8] sm:$0xff]  ;;  %v918_v51 = vld [vmem:[#allocation3 + $0xc0] sm:$0xff] }
 0xa6c   :  { %1368 = vmatprep.mubr.msk.f32.mxu1 %vm448_vm4, %v911_v48 }
 0xa6e   :  { %1351 = vmatmul.mubr.msk.f32.gmra.mrb[4].mxu0 %vm448_vm4, %v900_v21 }
 0xa6f   :  { %1369 = vmatmul.mubr.msk.f32.gmra.mrb[4].mxu1 %vm448_vm4, %v912_v22  ;;  %1353 = vmatprep.mubr.msk.f32.mxu0 %vm448_vm4, %v901_v23 }
 0xa70   :  { %1371 = vmatprep.mubr.msk.f32.mxu1 %vm448_vm4, %v913_v24 }
 0xa72   :  { %1354 = vmatmul.mubr.msk.f32.gmra.mrb[6].mxu0 %vm448_vm4, %v902_v25 }
 0xa73   :  { %1372 = vmatmul.mubr.msk.f32.gmra.mrb[6].mxu1 %vm448_vm4, %v914_v26  ;;  %1356 = vmatprep.mubr.msk.f32.mxu0 %vm448_vm4, %v903_v27 }
 0xa74   :  { %1374 = vmatprep.mubr.msk.f32.mxu1 %vm448_vm4, %v915_v28 }
 0xa76   :  { %1357 = vmatmul.mubr.msk.f32.gmra.mrb[8].mxu0 %vm448_vm4, %v904_v29 }
 0xa77   :  { %1375 = vmatmul.mubr.msk.f32.gmra.mrb[8].mxu1 %vm448_vm4, %v916_v30  ;;  %1359 = vmatprep.mubr.msk.f32.mxu0 %vm448_vm4, %v905_v31 }
 0xa78   :  { %1377 = vmatprep.mubr.msk.f32.mxu1 %vm448_vm4, %v917_v32 }
 0xa7a   :  { %1360 = vmatmul.mubr.msk.f32.gmra.mrb[10].mxu0 %vm448_vm4, %v906_v50 }
 0xa7b   :  { %1378 = vmatmul.mubr.msk.f32.gmra.mrb[10].mxu1 %vm448_vm4, %v918_v51 }
 0xb39   :  { %v1346_v53 = vpop.f32.mrb[0].mxu0 }
 0xb3a   :  { %v1364_v56 = vpop.f32.mrb[0].mxu1  ;;  %v1079_v57 = vadd.f32 %v1346_v53, %v2041_v52  ;;  %v1073_v59 = vpop.f32.mrb[1].mxu0 }
 0xb3b   :  { %v1139_v58 = vadd.f32 %v1364_v56, %v2041_v52  ;;  %v1133_v60 = vpop.f32.mrb[1].mxu1  ;;  %v1074_v61 = vadd.f32 %v2041_v52, %v1073_v59 }
 0xb3c   :  { %v1134_v62 = vadd.f32 %v2041_v52, %v1133_v60  ;;  %1194 = vst.msk [vmem:[%s2166_s6 + $0x8] sm:$0xff] %vm1192_vm7, %v1079_v57 }
 0xb3d   :  { %1206 = vst.msk [vmem:[%s2166_s6 + $0x68] sm:$0xff] %vm1192_vm7, %v1139_v58  ;;  %1193 = vst.msk [vmem:[%s2166_s6] sm:$0xff] %vm1192_vm7, %v1074_v61  ;;  %v1349_v63 = vpop.f32.mrb[2].mxu0 }
 0xb3e   :  { %1205 = vst.msk [vmem:[%s2166_s6 + $0x60] sm:$0xff] %vm1192_vm7, %v1134_v62  ;;  %v1367_v0 = vpop.f32.mrb[2].mxu1  ;;  %v1089_v1 = vadd.f32 %v1349_v63, %v2041_v52  ;;  %v1083_v55 = vpop.f32.mrb[3].mxu0 }
 0xb3f   :  { %v1149_v54 = vadd.f32 %v1367_v0, %v2041_v52  ;;  %v1143_v49 = vpop.f32.mrb[3].mxu1  ;;  %v1084_v2 = vadd.f32 %v2041_v52, %v1083_v55 }
 0xb40   :  { %v1144_v3 = vadd.f32 %v2041_v52, %v1143_v49  ;;  %1196 = vst.msk [vmem:[%s2166_s6 + $0x18] sm:$0xff] %vm1192_vm7, %v1089_v1 }
 0xb41   :  { %1208 = vst.msk [vmem:[%s2166_s6 + $0x78] sm:$0xff] %vm1192_vm7, %v1149_v54  ;;  %1195 = vst.msk [vmem:[%s2166_s6 + $0x10] sm:$0xff] %vm1192_vm7, %v1084_v2  ;;  %v1352_v4 = vpop.f32.mrb[4].mxu0 }
 0xb42   :  { %1207 = vst.msk [vmem:[%s2166_s6 + $0x70] sm:$0xff] %vm1192_vm7, %v1144_v3  ;;  %v1370_v5 = vpop.f32.mrb[4].mxu1  ;;  %v1099_v6 = vadd.f32 %v1352_v4, %v2041_v52  ;;  %v1093_v7 = vpop.f32.mrb[5].mxu0 }
 0xb43   :  { %v1159_v10 = vadd.f32 %v1370_v5, %v2041_v52  ;;  %v1153_v8 = vpop.f32.mrb[5].mxu1  ;;  %v1094_v15 = vadd.f32 %v2041_v52, %v1093_v7 }
 0xb44   :  { %v1154_v9 = vadd.f32 %v2041_v52, %v1153_v8  ;;  %1198 = vst.msk [vmem:[%s2166_s6 + $0x28] sm:$0xff] %vm1192_vm7, %v1099_v6 }
 0xb45   :  { %1210 = vst.msk [vmem:[%s2166_s6 + $0x88] sm:$0xff] %vm1192_vm7, %v1159_v10  ;;  %1197 = vst.msk [vmem:[%s2166_s6 + $0x20] sm:$0xff] %vm1192_vm7, %v1094_v15  ;;  %v1355_v11 = vpop.f32.mrb[6].mxu0 }
 0xb46   :  { %1209 = vst.msk [vmem:[%s2166_s6 + $0x80] sm:$0xff] %vm1192_vm7, %v1154_v9  ;;  %v1373_v12 = vpop.f32.mrb[6].mxu1  ;;  %v1109_v13 = vadd.f32 %v1355_v11, %v2041_v52  ;;  %v1103_v16 = vpop.f32.mrb[7].mxu0 }
 0xb47   :  { %v1169_v14 = vadd.f32 %v1373_v12, %v2041_v52  ;;  %v1163_v17 = vpop.f32.mrb[7].mxu1  ;;  %v1104_v18 = vadd.f32 %v2041_v52, %v1103_v16 }
 0xb48   :  { %v1164_v19 = vadd.f32 %v2041_v52, %v1163_v17  ;;  %1200 = vst.msk [vmem:[%s2166_s6 + $0x38] sm:$0xff] %vm1192_vm7, %v1109_v13 }
 0xb49   :  { %1212 = vst.msk [vmem:[%s2166_s6 + $0x98] sm:$0xff] %vm1192_vm7, %v1169_v14  ;;  %1199 = vst.msk [vmem:[%s2166_s6 + $0x30] sm:$0xff] %vm1192_vm7, %v1104_v18  ;;  %v1358_v20 = vpop.f32.mrb[8].mxu0 }
 0xb4a   :  { %1211 = vst.msk [vmem:[%s2166_s6 + $0x90] sm:$0xff] %vm1192_vm7, %v1164_v19  ;;  %v1376_v33 = vpop.f32.mrb[8].mxu1  ;;  %v1119_v34 = vadd.f32 %v1358_v20, %v2041_v52  ;;  %v1113_v36 = vpop.f32.mrb[9].mxu0 }
 0xb4b   :  { %v1179_v35 = vadd.f32 %v1376_v33, %v2041_v52  ;;  %v1173_v37 = vpop.f32.mrb[9].mxu1  ;;  %v1114_v38 = vadd.f32 %v2041_v52, %v1113_v36 }
 0xb4c   :  { %v1174_v39 = vadd.f32 %v2041_v52, %v1173_v37  ;;  %1202 = vst.msk [vmem:[%s2166_s6 + $0x48] sm:$0xff] %vm1192_vm7, %v1119_v34 }
 0xb4d   :  { %1214 = vst.msk [vmem:[%s2166_s6 + $0xa8] sm:$0xff] %vm1192_vm7, %v1179_v35  ;;  %1201 = vst.msk [vmem:[%s2166_s6 + $0x40] sm:$0xff] %vm1192_vm7, %v1114_v38  ;;  %v1361_v40 = vpop.f32.mrb[10].mxu0 }
 0xb4e   :  { %1213 = vst.msk [vmem:[%s2166_s6 + $0xa0] sm:$0xff] %vm1192_vm7, %v1174_v39  ;;  %v1379_v41 = vpop.f32.mrb[10].mxu1  ;;  %v1129_v42 = vadd.f32 %v1361_v40, %v2041_v52  ;;  %v1123_v44 = vpop.f32.mrb[11].mxu0 }
 0xb4f   :  { %v1189_v43 = vadd.f32 %v1379_v41, %v2041_v52  ;;  %v1183_v45 = vpop.f32.mrb[11].mxu1  ;;  %v1124_v46 = vadd.f32 %v2041_v52, %v1123_v44 }
 0xb50   :  { %v1184_v47 = vadd.f32 %v2041_v52, %v1183_v45  ;;  %1204 = vst.msk [vmem:[%s2166_s6 + $0x58] sm:$0xff] %vm1192_vm7, %v1129_v42 }
 0xb51   :  { %1216 = vst.msk [vmem:[%s2166_s6 + $0xb8] sm:$0xff] %vm1192_vm7, %v1189_v43  ;;  %1203 = vst.msk [vmem:[%s2166_s6 + $0x50] sm:$0xff] %vm1192_vm7, %v1124_v46 }
 0xb52   :  { %1215 = vst.msk [vmem:[%s2166_s6 + $0xb0] sm:$0xff] %vm1192_vm7, %v1184_v47 }

</bundles_post_ra>
